<compile_context>
chip_gen: v7x
topology: tpu7x:2x2x1
jax: 0.10.0
libtpu: 0.0.40
codegen_flags: <defaults>
</compile_context>

<pallas_src>
import jax
import jax.numpy as jnp
from jax.experimental import pallas as pl
from jax.experimental.pallas import tpu as pltpu

_VMEM_LIMIT = 48 * 1024 * 1024  # safe on v5e/v6e (128 MiB phys) and v7x (64 MiB)


# ----------------------------------------------------------------------------
# helpers
# ----------------------------------------------------------------------------
def _round_up(x, m):
    return ((x + m - 1) // m) * m


def _pick_tile(total, unit, target):
    """Largest multiple of `unit` that divides `total` and is <= max(target, unit)."""
    t = min(total, max(unit, (target // unit) * unit))
    t = (t // unit) * unit
    while total % t != 0:
        t -= unit
    return t


def _choose_time_chunk(T, target):
    """Pick (Tc, Tp). Tc == T (no padding) if T <= target, else a multiple of 8
    (needed: Tc is the second-to-last dim of the batch-major output block) that
    minimizes dead timesteps on the serial path."""
    if T <= target:
        return T, T
    best_tc, best_pad = 8, _round_up(T, 8) - T
    tc = 16
    while tc <= target:
        pad = _round_up(T, tc) - T
        if pad < best_pad or (pad == best_pad and tc > best_tc):
            best_tc, best_pad = tc, pad
        tc += 8
    return best_tc, _round_up(T, best_tc)


# ----------------------------------------------------------------------------
# Kernel 1 & 3: parallel tiled matmul + bias (bf16 MXU operands, f32 accumulate)
# ----------------------------------------------------------------------------
def _matmul_bias_kernel(x_ref, w_ref, b_ref, o_ref):
    acc = jnp.dot(
        x_ref[...].astype(jnp.bfloat16),           # no-op if already bf16
        w_ref[...],                                 # packed bf16 weight
        preferred_element_type=jnp.float32,
    )
    o_ref[...] = (acc + b_ref[...]).astype(o_ref.dtype)


def _matmul_bias(x, w, b, *, out_dtype=jnp.float32, tm_target=512, tn_target=512):
    """x: (M, K), w: (K, N) bf16, b: (1, N) f32 -> (M, N).  M%8==0, N%128==0."""
    M, K = x.shape
    _, N = w.shape
    tm = _pick_tile(M, 8, tm_target)
    tn = _pick_tile(N, 128, tn_target)
    return pl.pallas_call(
        _matmul_bias_kernel,
        out_shape=jax.ShapeDtypeStruct((M, N), out_dtype),
        grid_spec=pltpu.PrefetchScalarGridSpec(
            num_scalar_prefetch=0,
            grid=(M // tm, N // tn),
            in_specs=[
                pl.BlockSpec((tm, K), lambda i, j: (i, 0)),
                pl.BlockSpec((K, tn), lambda i, j: (0, j)),
                pl.BlockSpec((1, tn), lambda i, j: (0, j)),
            ],
            out_specs=pl.BlockSpec((tm, tn), lambda i, j: (i, j)),
        ),
        compiler_params=pltpu.CompilerParams(
            dimension_semantics=("parallel", "parallel"),
            vmem_limit_bytes=_VMEM_LIMIT,
        ),
    )(x, w, b)


# ----------------------------------------------------------------------------
# Kernel 2: recurrent LSTM core.  Only h @ W_hh^T + precomputed input gates and
# the elementwise state update live on the serial critical path.
# ----------------------------------------------------------------------------
def _lstm_recurrent_kernel(gx_ref, whh_ref, hout_ref, h_ref, c_ref):
    # gx_ref  : (Tc, Bblk, 4*Hp) bf16  precomputed  x_t @ W_ih^T + (b_ih + b_hh)
    # whh_ref : (Hp, 4*Hp)       bf16  recurrent weight (transposed, gate-padded)
    # hout_ref: (Bblk, Tc, Hp)   f32   hidden states, written batch-major
    # h_ref/c_ref: (Bblk, Hp)    f32   state carried in VMEM scratch
    @pl.when(pl.program_id(1) == 0)           # time axis start -> reset state
    def _():
        h_ref[...] = jnp.zeros_like(h_ref)
        c_ref[...] = jnp.zeros_like(c_ref)

    Hp = h_ref.shape[-1]
    Tc = gx_ref.shape[0]

    h = h_ref[...]                             # f32 state (accuracy)
    c = c_ref[...]
    h_bf = h.astype(jnp.bfloat16)              # bf16 operand for the MXU

    # Fully unrolled time loop (Tc static): amortizes per-grid-step overhead,
    # keeps every slice static / lane-aligned.
    for t in range(Tc):
        gates = (
            jnp.dot(h_bf, whh_ref[...], preferred_element_type=jnp.float32)
            + gx_ref[t].astype(jnp.float32)
        )
        i_g = jax.nn.sigmoid(gates[:, 0 * Hp:1 * Hp])
        f_g = jax.nn.sigmoid(gates[:, 1 * Hp:2 * Hp])
        g_g = jnp.tanh(gates[:, 2 * Hp:3 * Hp])
        o_g = jax.nn.sigmoid(gates[:, 3 * Hp:4 * Hp])
        c = f_g * c + i_g * g_g
        h = o_g * jnp.tanh(c)
        h_bf = h.astype(jnp.bfloat16)
        hout_ref[:, t, :] = h                  # batch-major store (no transpose later)

    h_ref[...] = h
    c_ref[...] = c


# ----------------------------------------------------------------------------
# Weight packing (transpose + gate-aligned zero padding, bf16 MXU operands)
# ----------------------------------------------------------------------------
def _pack_lstm_params(params, E, H, Ep, Hp):
    w_ih = params["w_ih"].astype(jnp.float32)                  # (4H, E)
    w_hh = params["w_hh"].astype(jnp.float32)                  # (4H, H)
    b = (params["b_ih"] + params["b_hh"]).astype(jnp.float32)  # (4H,)

    wih_t = jnp.zeros((Ep, 4 * Hp), jnp.float32)
    whh_t = jnp.zeros((Hp, 4 * Hp), jnp.float32)
    b_row = jnp.zeros((1, 4 * Hp), jnp.float32)
    for g in range(4):  # gate order i, f, g, o (matches PyTorch)
        wih_t = wih_t.at[:E, g * Hp:g * Hp + H].set(w_ih[g * H:(g + 1) * H, :].T)
        whh_t = whh_t.at[:H, g * Hp:g * Hp + H].set(w_hh[g * H:(g + 1) * H, :].T)
        b_row = b_row.at[0, g * Hp:g * Hp + H].set(b[g * H:(g + 1) * H])
    return wih_t.astype(jnp.bfloat16), whh_t.astype(jnp.bfloat16), b_row


def _pack_fc_params(params, H, V, Hp, Vp):
    wfc_t = jnp.zeros((Hp, Vp), jnp.float32)
    wfc_t = wfc_t.at[:H, :V].set(params["fc_w"].astype(jnp.float32).T)
    bfc = jnp.zeros((1, Vp), jnp.float32).at[0, :V].set(params["fc_b"].astype(jnp.float32))
    return wfc_t.astype(jnp.bfloat16), bfc


# ----------------------------------------------------------------------------
# Forward pass (mirrors DecoderRNN.forward)
# ----------------------------------------------------------------------------
def decoder_rnn_forward(features, captions, params, *, time_chunk=16):
    """features: (B, E) f32, captions: (B, S) int32 -> logits (B, S, V) f32."""
    embed_tbl = params["embed"]                                # (V, E)

    # Glue: embedding lookup of captions[:, :-1]; image features as step 0.
    cap_emb = jnp.take(embed_tbl, captions[:, :-1], axis=0)                   # (B, S-1, E)
    vals = jnp.concatenate(
        [features[:, None, :].astype(jnp.float32), cap_emb.astype(jnp.float32)], axis=1
    )                                                                         # (B, T, E)

    B, T, E = vals.shape
    H = params["w_hh"].shape[1]
    V = params["fc_w"].shape[0]

    # Lane/sublane aligned padded sizes.
    Bp = _round_up(max(B, 8), 8)
    Ep = _round_up(E, 128)
    Hp = _round_up(H, 128)
    Vp = _round_up(V, 128)
    Tc, Tp = _choose_time_chunk(T, time_chunk)
    Bblk = _pick_tile(Bp, 8, 16)   # keep per-core batch block small (vreg pressure)

    wih_bf, whh_bf, b_row = _pack_lstm_params(params, E, H, Ep, Hp)
    wfc_bf, bfc = _pack_fc_params(params, H, V, Hp, Vp)

    # Time-major, zero-padded bf16 input (Tp, Bp, Ep) for the hoisted projection.
    x = jnp.zeros((Tp, Bp, Ep), jnp.float32)
    x = x.at[:T, :B, :E].set(jnp.transpose(vals, (1, 0, 2)))
    x_bf = x.astype(jnp.bfloat16)

    # (1) Hoisted input projection: one big parallel bf16 matmul, M = Tp*Bp rows.
    #     gx stored bf16: it is the only per-step streamed tensor in the recurrence.
    gx = _matmul_bias(
        x_bf.reshape(Tp * Bp, Ep), wih_bf, b_row,
        out_dtype=jnp.bfloat16, tm_target=512, tn_target=512,
    ).reshape(Tp, Bp, 4 * Hp)

    # (2) Recurrent kernel: batch-parallel (v7x megacore) x sequential time chunks.
    h_all = pl.pallas_call(
        _lstm_recurrent_kernel,
        out_shape=jax.ShapeDtypeStruct((Bp, Tp, Hp), jnp.float32),
        grid_spec=pltpu.PrefetchScalarGridSpec(
            num_scalar_prefetch=0,
            grid=(Bp // Bblk, Tp // Tc),
            in_specs=[
                pl.BlockSpec((Tc, Bblk, 4 * Hp), lambda b, c: (c, b, 0)),
                # Grid-invariant recurrent weight: single-buffered.
                pl.BlockSpec((Hp, 4 * Hp), lambda b, c: (0, 0),
                             pipeline_mode=pl.Buffered(1)),
            ],
            out_specs=pl.BlockSpec((Bblk, Tc, Hp), lambda b, c: (b, c, 0)),
            scratch_shapes=[
                pltpu.VMEM((Bblk, Hp), jnp.float32),   # hidden state (f32)
                pltpu.VMEM((Bblk, Hp), jnp.float32),   # cell state (f32)
            ],
        ),
        compiler_params=pltpu.CompilerParams(
            dimension_semantics=("parallel", "arbitrary"),
            vmem_limit_bytes=_VMEM_LIMIT,
        ),
    )(gx, whh_bf)

    # (3) Hoisted fc_out vocab projection: large-M tile so the bf16 vocab weight
    #     is streamed from HBM as few times as possible; logits are produced
    #     directly in PyTorch's batch_first (B, T, V) layout (no transpose).
    h_flat = h_all.reshape(Bp * Tp, Hp)
    logits_flat = _matmul_bias(
        h_flat, wfc_bf, bfc, out_dtype=jnp.float32, tm_target=1024, tn_target=1024,
    )
    logits = logits_flat.reshape(Bp, Tp, Vp)
    return logits[:B, :T, :V]


# ----------------------------------------------------------------------------
# Pure-JAX f32 reference (same math) for the correctness check
# ----------------------------------------------------------------------------
def _reference_forward(features, captions, params):
    cap_emb = jnp.take(params["embed"], captions[:, :-1], axis=0)
    vals = jnp.concatenate([features[:, None, :], cap_emb], axis=1)
    B, T, E = vals.shape
    H = params["w_hh"].shape[1]
    wih_t = params["w_ih"].T
    whh_t = params["w_hh"].T
    b = params["b_ih"] + params["b_hh"]

    def step(carry, x_t):
        h, c = carry
        gates = x_t @ wih_t + h @ whh_t + b
        i = jax.nn.sigmoid(gates[:, 0 * H:1 * H])
        f = jax.nn.sigmoid(gates[:, 1 * H:2 * H])
        g = jnp.tanh(gates[:, 2 * H:3 * H])
        o = jax.nn.sigmoid(gates[:, 3 * H:4 * H])
        c = f * c + i * g
        h = o * jnp.tanh(c)
        return (h, c), h

    h0 = jnp.zeros((B, H), jnp.float32)
    c0 = jnp.zeros((B, H), jnp.float32)
    _, hs = jax.lax.scan(step, (h0, c0), jnp.transpose(vals, (1, 0, 2)))
    hs = jnp.transpose(hs, (1, 0, 2))                       # (B, T, H)
    return hs @ params["fc_w"].T + params["fc_b"]


def _init_params(key, embed_size, hidden_size, vocab_size):
    ks = jax.random.split(key, 7)
    scale = 0.1
    return {
        "embed": scale * jax.random.normal(ks[0], (vocab_size, embed_size), jnp.float32),
        "w_ih": scale * jax.random.normal(ks[1], (4 * hidden_size, embed_size), jnp.float32),
        "w_hh": scale * jax.random.normal(ks[2], (4 * hidden_size, hidden_size), jnp.float32),
        "b_ih": scale * jax.random.normal(ks[3], (4 * hidden_size,), jnp.float32),
        "b_hh": scale * jax.random.normal(ks[4], (4 * hidden_size,), jnp.float32),
        "fc_w": scale * jax.random.normal(ks[5], (vocab_size, hidden_size), jnp.float32),
        "fc_b": scale * jax.random.normal(ks[6], (vocab_size,), jnp.float32),
    }


if __name__ == "__main__":
    B, E, H, V, S = 2, 32, 32, 64, 8   # batch, embed, hidden, vocab, caption len

    key = jax.random.PRNGKey(0)
    k_p, k_f, k_c = jax.random.split(key, 3)
    params = _init_params(k_p, E, H, V)
    features = jax.random.normal(k_f, (B, E), jnp.float32)
    captions = jax.random.randint(k_c, (B, S), 0, V, jnp.int32)

    out = decoder_rnn_forward(features, captions, params)
    out = jax.block_until_ready(out)

    ref = jax.block_until_ready(_reference_forward(features, captions, params))
    assert out.shape == (B, S, V), out.shape
    # bf16 MXU operands / bf16 gx intermediate -> looser tolerance than pure f32.
    assert jnp.allclose(out, ref, atol=1e-2, rtol=1e-2), "mismatch vs reference"

    # TODO(synk): DecoderRNN.sample (host-side greedy decode loop) not implemented;
    # only the forward pass is mapped to Pallas kernels.
    print("KERNEL_OK")
</pallas_src>

<mosaic_0001>
module attributes {stable_mosaic.version = 11 : i64} {
  func.func @_matmul_bias_kernel(%arg0: i32, %arg1: i32, %arg2: memref<64x128xbf16, #tpu.memory_space<vmem>>, %arg3: memref<128x512xbf16, #tpu.memory_space<vmem>>, %arg4: memref<1x512xf32, #tpu.memory_space<vmem>>, %arg5: memref<64x512xbf16, #tpu.memory_space<vmem>>) attributes {dimension_semantics = [#tpu.dimension_semantics<parallel>, #tpu.dimension_semantics<parallel>], iteration_bounds = array<i64: 1, 1>, scalar_prefetch = 0 : i64, scratch_operands = 0 : i64, tpu.core_type = #tpu.core_type<tc>, window_params = [{transform_indices = @transform_0, window_bounds = array<i64: 64, 128>}, {transform_indices = @transform_1, window_bounds = array<i64: 128, 512>}, {transform_indices = @transform_2, window_bounds = array<i64: 1, 512>}, {transform_indices = @transform_3, window_bounds = array<i64: 64, 512>}]} {
    %c0 = arith.constant 0 : index
    %c0_0 = arith.constant 0 : index
    %0 = vector.load %arg2[%c0, %c0_0] : memref<64x128xbf16, #tpu.memory_space<vmem>>, vector<64x128xbf16>
    %c0_1 = arith.constant 0 : index
    %c0_2 = arith.constant 0 : index
    %1 = vector.load %arg3[%c0_1, %c0_2] : memref<128x512xbf16, #tpu.memory_space<vmem>>, vector<128x512xbf16>
    %cst = arith.constant dense<0.000000e+00> : vector<64x512xf32>
    %2 = tpu.matmul %0, %1, %cst {dimension_numbers = #tpu.dot_dimension_numbers<[1], [0], [0], [1], [0, 0, 1, 1], [], []>} : vector<64x128xbf16>, vector<128x512xbf16>, vector<64x512xf32> -> vector<64x512xf32>
    %c0_3 = arith.constant 0 : index
    %c0_4 = arith.constant 0 : index
    %3 = vector.load %arg4[%c0_3, %c0_4] : memref<1x512xf32, #tpu.memory_space<vmem>>, vector<1x512xf32>
    %4 = vector.broadcast %3 : vector<1x512xf32> to vector<64x512xf32>
    %5 = arith.addf %2, %4 : vector<64x512xf32>
    %6 = arith.truncf %5 : vector<64x512xf32> to vector<64x512xbf16>
    %c0_5 = arith.constant 0 : index
    %c0_6 = arith.constant 0 : index
    %7 = vector.load %arg5[%c0_5, %c0_6] : memref<64x512xbf16, #tpu.memory_space<vmem>>, vector<64x512xbf16>
    tpu.vector_store %arg5[%c0_5, %c0_6], %6 {strides = array<i32>} : memref<64x512xbf16, #tpu.memory_space<vmem>>, vector<64x512xbf16>,
    return
  }
  func.func @transform_0(%arg0: i32, %arg1: i32) -> (i32, i32) {
    %c0_i32 = arith.constant 0 : i32
    %c0_i32_0 = arith.constant 0 : i32
    return %arg0, %c0_i32 : i32, i32
  }
  func.func @transform_1(%arg0: i32, %arg1: i32) -> (i32, i32) {
    %c0_i32 = arith.constant 0 : i32
    %c0_i32_0 = arith.constant 0 : i32
    return %c0_i32, %arg1 : i32, i32
  }
  func.func @transform_2(%arg0: i32, %arg1: i32) -> (i32, i32) {
    %c0_i32 = arith.constant 0 : i32
    %c0_i32_0 = arith.constant 0 : i32
    return %c0_i32, %arg1 : i32, i32
  }
  func.func @transform_3(%arg0: i32, %arg1: i32) -> (i32, i32) {
    %c0_i32 = arith.constant 0 : i32
    return %arg0, %arg1 : i32, i32
  }
}

</mosaic_0001>

<bundles_post_ra>
// kernel: tpu_custom_call.1
= control target key start
LH: loop header
LB: loop body
LE: loop exit
PB: predicated region body
PF: predicated region fallthrough
CT: control target
= control target key end

     0   :  { %8 = vsyncpa [#allocation3], 0  ;;  %s887_s0 = inlined_call_operand.hbm [shape: bf16[64,128], index: 0, kind: input, shape index: {}]   ;;  %s888_s1 = inlined_call_operand.hbm [shape: bf16[128,512], index: 1, kind: input, shape index: {}]   ;;  %s889_s2 = inlined_call_operand.vmem [shape: f32[1,512], index: 2, kind: input, shape index: {}]   ;;  %s890_s3 = inlined_call_operand.hbm [shape: bf16[64,512], index: 3, kind: output, shape index: {}]  }
   0x1   :  { %9 = vsyncpa [#allocation6], 0 }
   0x2   :  { %10 = vsyncpa [#allocation4], 0  ;;  %s766_s12 = smov [#allocation2]   ;;  %s694_s16 = scalar_lea.hbm %s887_s0, 512 }
   0x3   :  { %s16_s13 = sshll.u32 %s766_s12, 4  ;;  %p695_p0 = scmp.ne.s32.totalorder %s887_s0, %s694_s16  ;;  %s17_s13 = int_to_ptr.vmem [resolvable:$true] %s16_s13 }
   0x4   :  { %p698_p1 = scmp.lt.u32.totalorder %s694_s16, %s887_s0 }
   0x6   :  { %p700_p2 = pnand %p698_p1, %p695_p0 }
   0x8   :  { %703 = shalt.err (!%p700_p2)
}
   0x9   :  { %s704_s21 = scalar_lea.vmem %s17_s13, 512  ;;  %p709_p4 = scmp.lt.s32.totalorder %s17_s13, %s17_s13 }
   0xa   :  { %p705_p3 = scmp.ne.s32.totalorder %s17_s13, %s704_s21  ;;  %p710_p5 = scmp.lt.s32.totalorder %s704_s21, %s704_s21 }
   0xc   :  { %p711_p6 = por %p710_p5, %p709_p4 }
   0xe   :  { %p712_p7 = pnand %p711_p6, %p705_p3 }
  0x10   :  { %715 = shalt.err (!%p712_p7)
}
  0x11   :  { %s767_s22 = smov 64   ;;  %s768_s23 = smov 4  }
  0x12   :  { %22 = dma.hbm_to_vmem [thread:$0]  %s887_s0, 512, %s17_s13, [#allocation3], %s767_s22, %s767_s22, %s768_s23  }
  0x13   :  { %s769_s26 = smov [#allocation5]   ;;  %s716_s30 = scalar_lea.hbm %s888_s1, 4096 }
  0x14   :  { %s28_s27 = sshll.u32 %s769_s26, 4  ;;  %p717_p8 = scmp.ne.s32.totalorder %s888_s1, %s716_s30  ;;  %s29_s27 = int_to_ptr.vmem [resolvable:$true] %s28_s27 }
  0x15   :  { %p720_p9 = scmp.lt.u32.totalorder %s716_s30, %s888_s1 }
  0x17   :  { %p722_p10 = pnand %p720_p9, %p717_p8 }
  0x19   :  { %725 = shalt.err (!%p722_p10)
}
  0x1a   :  { %s726_s8 = scalar_lea.vmem %s29_s27, 4096  ;;  %p731_p12 = scmp.lt.s32.totalorder %s29_s27, %s29_s27 }
  0x1b   :  { %p727_p11 = scmp.ne.s32.totalorder %s29_s27, %s726_s8  ;;  %p732_p13 = scmp.lt.s32.totalorder %s726_s8, %s726_s8 }
  0x1d   :  { %p733_p0 = por %p732_p13, %p731_p12 }
  0x1f   :  { %p734_p1 = pnand %p733_p0, %p727_p11 }
  0x21   :  { %737 = shalt.err (!%p734_p1)
}
  0x22   :  { %s770_s0 = smov 256   ;;  %s771_s9 = smov 16  }
  0x23   :  { %34 = dma.hbm_to_vmem [thread:$0]  %s888_s1, 4096, %s29_s27, [#allocation6], %s770_s0, %s770_s0, %s771_s9  }
  0x24   :  { %760 = dma.done.wait [#allocation3], 512  }
  0x25   :  { %761 = vsyncadd [#allocation3], 4294966784 }
  0x26   :  { %762 = dma.done.wait [#allocation6], 4096  }
  0x27   :  { %763 = vsyncadd [#allocation6], 4294963200  ;;  %v772_v0 = vmov 0   ;;  %v642_v1 = vld [vmem:[#allocation5 + $0x4] ss:$16 sps:$4 sm:$0xff]   ;;  %v691_v34 = vld [vmem:[#allocation2 + $0x8] sm:$0xff]   ;;  %v86_v37 = vlaneseq }
  0x28   :  { %322 = vmatprep.mubr.bf16.mxu0 %v772_v0  ;;  %395 = vmatprep.mubr.bf16.mxu1 %v772_v0  ;;  %v644_v2 = vld [vmem:[#allocation5 + $0xc] ss:$16 sps:$4 sm:$0xff]   ;;  %v646_v3 = vld [vmem:[#allocation5] ss:$16 sps:$4 sm:$0xff]   ;;  %v647_v4 = vld [vmem:[#allocation5 + $0x8] ss:$16 sps:$4 sm:$0xff]  }
  0x29   :  { %290 = vmatprep.subr.bf16.mxu0 %v642_v1  ;;  %363 = vmatprep.subr.bf16.mxu1 %v644_v2  ;;  %v648_v5 = vld [vmem:[#allocation5 + $0x24] ss:$16 sps:$4 sm:$0xff]   ;;  %v650_v6 = vld [vmem:[#allocation5 + $0x2c] ss:$16 sps:$4 sm:$0xff]   ;;  %v652_v7 = vld [vmem:[#allocation5 + $0x20] ss:$16 sps:$4 sm:$0xff]  }
  0x2a   :  { %291 = vmatpush1.bf16.msra.mxu0 %v646_v3  ;;  %364 = vmatpush1.bf16.msra.mxu1 %v647_v4  ;;  %v653_v8 = vld [vmem:[#allocation5 + $0x28] ss:$16 sps:$4 sm:$0xff]   ;;  %v654_v9 = vld [vmem:[#allocation5 + $0x44] ss:$16 sps:$4 sm:$0xff]   ;;  %v656_v10 = vld [vmem:[#allocation5 + $0x4c] ss:$16 sps:$4 sm:$0xff]  }
  0x2b   :  { %292 = vmatprep.subr.bf16.mxu0 %v648_v5  ;;  %365 = vmatprep.subr.bf16.mxu1 %v650_v6  ;;  %v658_v11 = vld [vmem:[#allocation5 + $0x40] ss:$16 sps:$4 sm:$0xff]   ;;  %v659_v12 = vld [vmem:[#allocation5 + $0x48] ss:$16 sps:$4 sm:$0xff]   ;;  %v660_v13 = vld [vmem:[#allocation5 + $0x64] ss:$16 sps:$4 sm:$0xff]  }
  0x2c   :  { %v662_v14 = vld [vmem:[#allocation5 + $0x6c] ss:$16 sps:$4 sm:$0xff]   ;;  %v664_v15 = vld [vmem:[#allocation5 + $0x60] ss:$16 sps:$4 sm:$0xff]   ;;  %v665_v16 = vld [vmem:[#allocation5 + $0x68] ss:$16 sps:$4 sm:$0xff]  }
  0x2d   :  { %v666_v17 = vld [vmem:[#allocation5 + $0x84] ss:$16 sps:$4 sm:$0xff]   ;;  %v668_v18 = vld [vmem:[#allocation5 + $0x8c] ss:$16 sps:$4 sm:$0xff]   ;;  %v670_v19 = vld [vmem:[#allocation5 + $0x80] ss:$16 sps:$4 sm:$0xff]  }
  0x2e   :  { %293 = vmatpush1.bf16.msra.mxu0 %v652_v7  ;;  %366 = vmatpush1.bf16.msra.mxu1 %v653_v8  ;;  %v671_v20 = vld [vmem:[#allocation5 + $0x88] ss:$16 sps:$4 sm:$0xff]   ;;  %v672_v21 = vld [vmem:[#allocation5 + $0xa4] ss:$16 sps:$4 sm:$0xff]   ;;  %v674_v22 = vld [vmem:[#allocation5 + $0xac] ss:$16 sps:$4 sm:$0xff]  }
  0x2f   :  { %294 = vmatprep.subr.bf16.mxu0 %v654_v9  ;;  %367 = vmatprep.subr.bf16.mxu1 %v656_v10  ;;  %v676_v23 = vld [vmem:[#allocation5 + $0xa0] ss:$16 sps:$4 sm:$0xff]   ;;  %v677_v24 = vld [vmem:[#allocation5 + $0xa8] ss:$16 sps:$4 sm:$0xff]   ;;  %v678_v25 = vld [vmem:[#allocation5 + $0xc4] ss:$16 sps:$4 sm:$0xff]  }
  0x30   :  { %v680_v26 = vld [vmem:[#allocation5 + $0xcc] ss:$16 sps:$4 sm:$0xff]   ;;  %v682_v27 = vld [vmem:[#allocation5 + $0xc0] ss:$16 sps:$4 sm:$0xff]   ;;  %v683_v28 = vld [vmem:[#allocation5 + $0xc8] ss:$16 sps:$4 sm:$0xff]  }
  0x31   :  { %v684_v29 = vld [vmem:[#allocation5 + $0xe4] ss:$16 sps:$4 sm:$0xff]   ;;  %v686_v30 = vld [vmem:[#allocation5 + $0xec] ss:$16 sps:$4 sm:$0xff]   ;;  %v688_v31 = vld [vmem:[#allocation5 + $0xe0] ss:$16 sps:$4 sm:$0xff]  }
  0x32   :  { %295 = vmatpush1.bf16.msra.mxu0 %v658_v11  ;;  %368 = vmatpush1.bf16.msra.mxu1 %v659_v12  ;;  %v689_v32 = vld [vmem:[#allocation5 + $0xe8] ss:$16 sps:$4 sm:$0xff]   ;;  %v690_v33 = vld [vmem:[#allocation2] sm:$0xff]   ;;  %v692_v35 = vld [vmem:[#allocation2 + $0x10] sm:$0xff]   ;;  %v87_v38 = vshrl.u32 %v86_v37, 7 }
  0x33   :  { %296 = vmatprep.subr.bf16.mxu0 %v660_v13  ;;  %369 = vmatprep.subr.bf16.mxu1 %v662_v14  ;;  %v693_v36 = vld [vmem:[#allocation2 + $0x18] sm:$0xff]   ;;  %v84_v41 = vld [vmem:[%s889_s2] sm:$0xf]  ;;  %s773_s2 = smov [#allocation7]  }
  0x34   :  { %v88_v39 = vsub.s32 0, %v87_v38  ;;  %v96_v40 = vsub.s32 2, %v87_v38  ;;  %v92_v42 = vsub.s32 1, %v87_v38  ;;  %v100_v43 = vsub.s32 3, %v87_v38  ;;  %s553_s13 = sshll.u32 %s773_s2, 4  ;;  %s554_s13 = int_to_ptr.vmem [resolvable:$true] %s553_s13 }
  0x35   :  { %s738_s14 = scalar_lea.vmem %s554_s13, 2048  ;;  %p743_p3 = scmp.lt.s32.totalorder %s554_s13, %s554_s13 }
  0x36   :  { %297 = vmatpush1.bf16.msra.mxu0 %v664_v15  ;;  %370 = vmatpush1.bf16.msra.mxu1 %v665_v16  ;;  %v832_v44 = vrot.slane %v84_v41, %v88_v39  ;;  %v834_v45 = vrot.slane %v84_v41, %v96_v40  ;;  %v836_v46 = vrot.slane %v84_v41, %v92_v42  ;;  %p739_p2 = scmp.ne.s32.totalorder %s554_s13, %s738_s14  ;;  %p744_p4 = scmp.lt.s32.totalorder %s738_s14, %s738_s14 }
  0x37   :  { %298 = vmatprep.subr.bf16.mxu0 %v666_v17  ;;  %371 = vmatprep.subr.bf16.mxu1 %v668_v18  ;;  %v838_v47 = vrot.slane %v84_v41, %v100_v43 }
  0x38   :  { %p745_p5 = por %p744_p4, %p743_p3 }
  0x3a   :  { %299 = vmatpush1.bf16.msra.mxu0 %v670_v19  ;;  %372 = vmatpush1.bf16.msra.mxu1 %v671_v20  ;;  %p746_p6 = pnand %p745_p5, %p739_p2 }
  0x3b   :  { %300 = vmatprep.subr.bf16.mxu0 %v672_v21  ;;  %373 = vmatprep.subr.bf16.mxu1 %v674_v22 }
  0x3e   :  { %301 = vmatpush1.bf16.msra.mxu0 %v676_v23  ;;  %374 = vmatpush1.bf16.msra.mxu1 %v677_v24 }
  0x3f   :  { %302 = vmatprep.subr.bf16.mxu0 %v678_v25  ;;  %375 = vmatprep.subr.bf16.mxu1 %v680_v26 }
  0x42   :  { %303 = vmatpush1.bf16.msra.mxu0 %v682_v27  ;;  %376 = vmatpush1.bf16.msra.mxu1 %v683_v28 }
  0x43   :  { %304 = vmatprep.subr.bf16.mxu0 %v684_v29  ;;  %377 = vmatprep.subr.bf16.mxu1 %v686_v30 }
  0x46   :  { %305 = vmatpush1.bf16.msra.mxu0 %v688_v31  ;;  %378 = vmatpush1.bf16.msra.mxu1 %v689_v32 }
  0x49   :  { %323 = vmatmul.mubr.bf16.vlgmr.msra.gmra.mrb[0].mxu0 %v690_v33  ;;  %396 = vmatmul.mubr.bf16.vlgmr.msra.gmra.mrb[0].mxu1 %v690_v33 }
  0x4a   :  { %332 = vmatprep.mubr.bf16.mxu0 %v772_v0  ;;  %405 = vmatprep.mubr.bf16.mxu1 %v772_v0 }
  0x51   :  { %333 = vmatmul.mubr.bf16.gmra.mrb[4].mxu0 %v691_v34  ;;  %406 = vmatmul.mubr.bf16.gmra.mrb[4].mxu1 %v691_v34 }
  0x52   :  { %342 = vmatprep.mubr.bf16.mxu0 %v772_v0  ;;  %415 = vmatprep.mubr.bf16.mxu1 %v772_v0 }
  0x59   :  { %343 = vmatmul.mubr.bf16.gmra.mrb[8].mxu0 %v692_v35  ;;  %416 = vmatmul.mubr.bf16.gmra.mrb[8].mxu1 %v692_v35 }
  0x5a   :  { %352 = vmatprep.mubr.bf16.mxu0 %v772_v0  ;;  %425 = vmatprep.mubr.bf16.mxu1 %v772_v0 }
  0x61   :  { %353 = vmatmul.mubr.bf16.gmra.mrb[12].mxu0 %v693_v36  ;;  %426 = vmatmul.mubr.bf16.gmra.mrb[12].mxu1 %v693_v36 }
 0x11c   :  { %v324_v48 = vpop.f32.mrb[0].mxu0  ;;  %v397_v49 = vpop.f32.mrb[0].mxu1 }
 0x11d   :  { %v325_v50 = vadd.f32 %v324_v48, %v832_v44  ;;  %v398_v51 = vadd.f32 %v397_v49, %v834_v45  ;;  %v326_v52 = vpop.f32.mrb[1].mxu0  ;;  %v399_v53 = vpop.f32.mrb[1].mxu1 }
 0x11e   :  { %v327_v54 = vadd.f32 %v326_v52, %v836_v46  ;;  %v400_v55 = vadd.f32 %v399_v53, %v838_v47  ;;  %v328_v56 = vpop.f32.mrb[2].mxu0  ;;  %v401_v57 = vpop.f32.mrb[2].mxu1 }
 0x11f   :  { %v329_v58 = vadd.f32 %v328_v56, %v832_v44  ;;  %v402_v59 = vadd.f32 %v401_v57, %v834_v45  ;;  %v330_v60 = vpop.f32.mrb[3].mxu0  ;;  %v403_v61 = vpop.f32.mrb[3].mxu1 }
 0x120   :  { %v618_v62 = vpack.c.bf16 %v327_v54, %v325_v50  ;;  %v619_v63 = vpack.c.bf16 %v400_v55, %v398_v51  ;;  %v331_v0 = vadd.f32 %v330_v60, %v836_v46  ;;  %v404_v1 = vadd.f32 %v403_v61, %v838_v47 }
 0x122   :  { %532 = vst [vmem:[#allocation7] sm:$0xff] %v618_v62  ;;  %533 = vst [vmem:[#allocation7 + $0x8] sm:$0xff] %v619_v63  ;;  %v620_v2 = vpack.c.bf16 %v331_v0, %v329_v58  ;;  %v621_v3 = vpack.c.bf16 %v404_v1, %v402_v59 }
 0x124   :  { %534 = vst [vmem:[#allocation7 + $0x10] sm:$0xff] %v620_v2  ;;  %535 = vst [vmem:[#allocation7 + $0x18] sm:$0xff] %v621_v3  ;;  %v334_v4 = vpop.f32.mrb[4].mxu0  ;;  %v407_v5 = vpop.f32.mrb[4].mxu1 }
 0x125   :  { %v335_v6 = vadd.f32 %v334_v4, %v832_v44  ;;  %v408_v7 = vadd.f32 %v407_v5, %v834_v45  ;;  %v336_v8 = vpop.f32.mrb[5].mxu0  ;;  %v409_v9 = vpop.f32.mrb[5].mxu1 }
 0x126   :  { %v337_v10 = vadd.f32 %v336_v8, %v836_v46  ;;  %v410_v11 = vadd.f32 %v409_v9, %v838_v47  ;;  %v338_v12 = vpop.f32.mrb[6].mxu0  ;;  %v411_v13 = vpop.f32.mrb[6].mxu1 }
 0x127   :  { %v339_v14 = vadd.f32 %v338_v12, %v832_v44  ;;  %v412_v15 = vadd.f32 %v411_v13, %v834_v45  ;;  %v340_v16 = vpop.f32.mrb[7].mxu0  ;;  %v413_v17 = vpop.f32.mrb[7].mxu1 }
 0x128   :  { %v622_v18 = vpack.c.bf16 %v337_v10, %v335_v6  ;;  %v623_v19 = vpack.c.bf16 %v410_v11, %v408_v7  ;;  %v341_v20 = vadd.f32 %v340_v16, %v836_v46  ;;  %v414_v21 = vadd.f32 %v413_v17, %v838_v47 }
 0x12a   :  { %536 = vst [vmem:[#allocation7 + $0x20] sm:$0xff] %v622_v18  ;;  %537 = vst [vmem:[#allocation7 + $0x28] sm:$0xff] %v623_v19  ;;  %v624_v22 = vpack.c.bf16 %v341_v20, %v339_v14  ;;  %v625_v23 = vpack.c.bf16 %v414_v21, %v412_v15 }
 0x12c   :  { %538 = vst [vmem:[#allocation7 + $0x30] sm:$0xff] %v624_v22  ;;  %539 = vst [vmem:[#allocation7 + $0x38] sm:$0xff] %v625_v23  ;;  %v344_v24 = vpop.f32.mrb[8].mxu0  ;;  %v417_v25 = vpop.f32.mrb[8].mxu1 }
 0x12d   :  { %v345_v26 = vadd.f32 %v344_v24, %v832_v44  ;;  %v418_v27 = vadd.f32 %v417_v25, %v834_v45  ;;  %v346_v28 = vpop.f32.mrb[9].mxu0  ;;  %v419_v29 = vpop.f32.mrb[9].mxu1 }
 0x12e   :  { %v347_v30 = vadd.f32 %v346_v28, %v836_v46  ;;  %v420_v31 = vadd.f32 %v419_v29, %v838_v47  ;;  %v348_v32 = vpop.f32.mrb[10].mxu0  ;;  %v421_v33 = vpop.f32.mrb[10].mxu1 }
 0x12f   :  { %v349_v34 = vadd.f32 %v348_v32, %v832_v44  ;;  %v422_v35 = vadd.f32 %v421_v33, %v834_v45  ;;  %v350_v36 = vpop.f32.mrb[11].mxu0  ;;  %v423_v37 = vpop.f32.mrb[11].mxu1 }
 0x130   :  { %v626_v38 = vpack.c.bf16 %v347_v30, %v345_v26  ;;  %v627_v39 = vpack.c.bf16 %v420_v31, %v418_v27  ;;  %v351_v40 = vadd.f32 %v350_v36, %v836_v46  ;;  %v424_v41 = vadd.f32 %v423_v37, %v838_v47 }
 0x132   :  { %540 = vst [vmem:[#allocation7 + $0x40] sm:$0xff] %v626_v38  ;;  %541 = vst [vmem:[#allocation7 + $0x48] sm:$0xff] %v627_v39  ;;  %v628_v42 = vpack.c.bf16 %v351_v40, %v349_v34  ;;  %v629_v43 = vpack.c.bf16 %v424_v41, %v422_v35 }
 0x134   :  { %542 = vst [vmem:[#allocation7 + $0x50] sm:$0xff] %v628_v42  ;;  %543 = vst [vmem:[#allocation7 + $0x58] sm:$0xff] %v629_v43  ;;  %v354_v48 = vpop.f32.mrb[12].mxu0  ;;  %v427_v49 = vpop.f32.mrb[12].mxu1 }
 0x135   :  { %v355_v50 = vadd.f32 %v354_v48, %v832_v44  ;;  %v428_v51 = vadd.f32 %v427_v49, %v834_v45  ;;  %v356_v52 = vpop.f32.mrb[13].mxu0  ;;  %v429_v53 = vpop.f32.mrb[13].mxu1 }
 0x136   :  { %v357_v54 = vadd.f32 %v356_v52, %v836_v46  ;;  %v430_v55 = vadd.f32 %v429_v53, %v838_v47  ;;  %v358_v56 = vpop.f32.mrb[14].mxu0  ;;  %v431_v57 = vpop.f32.mrb[14].mxu1 }
 0x137   :  { %v359_v58 = vadd.f32 %v358_v56, %v832_v44  ;;  %v432_v59 = vadd.f32 %v431_v57, %v834_v45  ;;  %v360_v60 = vpop.f32.mrb[15].mxu0  ;;  %v433_v61 = vpop.f32.mrb[15].mxu1 }
 0x138   :  { %v630_v62 = vpack.c.bf16 %v357_v54, %v355_v50  ;;  %v631_v63 = vpack.c.bf16 %v430_v55, %v428_v51  ;;  %v361_v0 = vadd.f32 %v360_v60, %v836_v46  ;;  %v434_v1 = vadd.f32 %v433_v61, %v838_v47 }
 0x13a   :  { %544 = vst [vmem:[#allocation7 + $0x60] sm:$0xff] %v630_v62  ;;  %545 = vst [vmem:[#allocation7 + $0x68] sm:$0xff] %v631_v63  ;;  %v632_v2 = vpack.c.bf16 %v361_v0, %v359_v58  ;;  %v633_v3 = vpack.c.bf16 %v434_v1, %v432_v59 }
 0x13c   :  { %546 = vst [vmem:[#allocation7 + $0x70] sm:$0xff] %v632_v2  ;;  %547 = vst [vmem:[#allocation7 + $0x78] sm:$0xff] %v633_v3 }
 0x13d   :  { %749 = shalt.err (!%p746_p6)
}
 0x13e   :  { %s750_s17 = scalar_lea.hbm %s890_s3, 2048 }
 0x13f   :  { %p751_p7 = scmp.ne.s32.totalorder %s890_s3, %s750_s17  ;;  %p754_p8 = scmp.lt.u32.totalorder %s750_s17, %s890_s3 }
 0x141   :  { %p756_p9 = pnand %p754_p8, %p751_p7 }
 0x143   :  { %759 = shalt.err (!%p756_p9)
}
 0x144   :  { %559 = dma.vmem_to_hbm [thread:$0]  %s554_s13, 2048, %s890_s3, [#allocation4], %s770_s0, %s770_s0, %s771_s9  }
 0x145   :  { %764 = dma.done.wait [#allocation4], 2048  }
 0x146   :  { %765 = vsyncadd [#allocation4], 4294965248 }
 0x147   :  { %563 = vsyncpa [#allocation3], 1 }
 0x148   :  { %564 = vsyncpa [#allocation6], 1 }
 0x149   :  { %565 = vsyncpa [#allocation4], 1 }

</bundles_post_ra>
